<compile_context>
chip_gen: v6e
topology: v6e:2x2x1
jax: 0.10.0
libtpu: 0.0.40
codegen_flags: <defaults>
</compile_context>

<pallas_src>
import functools

import jax
import jax.numpy as jnp
from jax.experimental import pallas as pl
from jax.experimental.pallas import tpu as pltpu


def _round_up(a: int, m: int) -> int:
    return ((a + m - 1) // m) * m


def _mlp2_packed_kernel(xp_ref, wbd_ref, bd_ref, o_ref):
    # xp_ref : (TP, P*F) VMEM  -- P logical rows packed per physical row
    # wbd_ref: (P*F, P)  VMEM  -- block-diagonal copies of w[:,1]-w[:,0]
    # bd_ref : (1,)      SMEM  -- b[1]-b[0]
    # o_ref  : (TP, P)   VMEM  -- p1 = P(class 1) per logical row
    #
    # Segmented reduction over each 32-lane feature block via the MXU:
    # d[r, j] = sum_f xp[r, 32*j + f] * wd[f]  ==  logit1 - logit0 of the
    # logical row P*r + j.
    d = jnp.dot(xp_ref[...], wbd_ref[...], preferred_element_type=jnp.float32)
    d = d + bd_ref[0]
    # p1 = sigmoid(d).  exp(-d) may overflow to inf for very negative d, which
    # still yields the correct softmax limit p1 = 0.
    o_ref[...] = (1.0 / (1.0 + jnp.exp(-d))).astype(o_ref.dtype)


def _p1_packed(xp, wbd, bd, tp):
    """Class-1 probabilities (flat, logical-row order) for packed input.

    xp : (R, P*F) float32 -- P logical rows per physical row
    wbd: (P*F, P) float32 -- block-diagonal weight-difference matrix
    bd : (1,)     float32 -- bias difference
    tp : physical rows per grid step (multiple of 8)
    """
    R, K = xp.shape
    P = wbd.shape[1]
    n_blocks = pl.cdiv(R, tp)

    out = pl.pallas_call(
        _mlp2_packed_kernel,
        # Sized to whole blocks so output blocks are never partial; the tail
        # rows (if the last input block is partial) hold garbage and are
        # sliced off by the caller.
        out_shape=jax.ShapeDtypeStruct((n_blocks * tp, P), jnp.float32),
        grid_spec=pltpu.PrefetchScalarGridSpec(
            num_scalar_prefetch=0,
            grid=(n_blocks,),
            in_specs=[
                pl.BlockSpec((tp, K), lambda i: (i, 0)),            # packed x tile
                pl.BlockSpec((K, P), lambda i: (0, 0)),             # block-diag weights
                pl.BlockSpec(memory_space=pltpu.MemorySpace.SMEM),  # bias diff scalar
            ],
            out_specs=pl.BlockSpec((tp, P), lambda i: (i, 0)),
        ),
        compiler_params=pltpu.CompilerParams(
            dimension_semantics=("parallel",),  # shard batch tiles across TCs
            vmem_limit_bytes=32 * 1024 * 1024,
        ),
    )(xp, wbd, bd)
    return out.reshape(-1)


@functools.partial(jax.jit, static_argnames=("tm",))
def mlp_forward(x, w, b, *, tm=16384):
    """Forward pass of nn.Linear(F, 2) + nn.Softmax(dim=1).

    x: (N, F) float32
    w: (F, 2) float32 (transposed vs nn.Linear's (out, in) layout)
    b: (2,)   float32
    returns: (N, 2) float32 softmax probabilities.
    """
    N, F = x.shape
    F2, C = w.shape
    assert F == F2 and C == 2, "kernel is specialized to the layers=[F, 2] MLP"
    assert N >= 1

    # Largest packing factor in {8,4,2,1} dividing N -> the (N,F)->(N//P, P*F)
    # reshape is a pure bitcast of the contiguous row-major buffer (no copy).
    P = 8
    while N % P:
        P //= 2
    K = P * F

    x = x.astype(jnp.float32)
    wd = (w[:, 1] - w[:, 0]).astype(jnp.float32)                 # (F,)
    bd = (b[1] - b[0]).reshape(1).astype(jnp.float32)            # (1,)
    # Block-diagonal weight: wbd[P*j' + f, j] = wd[f] if j' == j else 0.
    eye = jnp.eye(P, dtype=jnp.float32)                          # (P, P)
    wbd = (eye[:, None, :] * wd[None, :, None]).reshape(K, P)    # (P*F, P)

    xp = x.reshape(N // P, K)                                    # zero-copy pack
    R = N // P

    # --- tile-size selection (physical rows per grid step) -----------------
    # Desired size from tm (logical rows), rounded to a sublane multiple.
    desired_tp = max(8, _round_up(max(tm // P, 1), 8))
    # VMEM cap: lane-padded block bytes per physical row, double-buffered in
    # and out blocks, kept under ~8 MiB so it fits every generation easily.
    padded_row_bytes = 4 * (_round_up(K, 128) + _round_up(P, 128))
    cap_tp = max(8, ((8 * 1024 * 1024) // (2 * padded_row_bytes)) // 8 * 8)
    # Keep >= 2 grid steps when possible so "parallel" can use both v7x cores.
    two_step_tp = max(8, _round_up(pl.cdiv(R, 2), 8))
    tp = min(desired_tp, cap_tp, two_step_tp)

    p1 = _p1_packed(xp, wbd, bd, tp)[:N]                         # (N,)
    # Rebuild the 2-class softmax in the XLA wrapper (lane-dense kernel output).
    return jnp.stack([1.0 - p1, p1], axis=-1)


def reference_forward(x, w, b):
    logits = x @ w + b
    return jax.nn.softmax(logits, axis=1)


if __name__ == "__main__":
    key = jax.random.PRNGKey(0)
    k_x, k_w, k_b, k_x2 = jax.random.split(key, 4)

    # Shapes consistent with the module: X is (N, F), layers = [F, 2].
    F, C = 32, 2
    bound = 1.0 / (F ** 0.5)  # roughly PyTorch Linear init scale
    w = jax.random.uniform(k_w, (F, C), minval=-bound, maxval=bound,
                           dtype=jnp.float32)
    b = jax.random.uniform(k_b, (C,), minval=-bound, maxval=bound,
                           dtype=jnp.float32)

    # Case 1: small batch, N not a multiple of 8 (adaptive packing P=4,
    # single partial trailing block, no padded copy of x).
    N1 = 20
    x1 = jax.random.normal(k_x, (N1, F), dtype=jnp.float32)
    out1 = jax.block_until_ready(mlp_forward(x1, w, b))
    ref1 = reference_forward(x1, w, b)
    assert out1.shape == (N1, C)
    assert jnp.allclose(out1, ref1, atol=1e-5, rtol=1e-4), "mismatch vs reference"
    assert jnp.allclose(jnp.sum(out1, axis=1), jnp.ones((N1,)), atol=1e-5)

    # Case 2: multiple of 8 (P=8, zero-copy pack) with a small tm to force a
    # multi-step grid.
    N2 = 2048
    x2 = jax.random.normal(k_x2, (N2, F), dtype=jnp.float32)
    out2 = jax.block_until_ready(mlp_forward(x2, w, b, tm=512))
    ref2 = reference_forward(x2, w, b)
    assert out2.shape == (N2, C)
    assert jnp.allclose(out2, ref2, atol=1e-5, rtol=1e-4), "tiled mismatch"

    print("KERNEL_OK")
</pallas_src>

<mosaic_0001>
module attributes {stable_mosaic.version = 11 : i64} {
  func.func @_mlp2_packed_kernel(%arg0: i32, %arg1: memref<8x128xf32, #tpu.memory_space<vmem>>, %arg2: memref<128x4xf32, #tpu.memory_space<vmem>>, %arg3: memref<1xf32, #tpu.memory_space<smem>>, %arg4: memref<8x4xf32, #tpu.memory_space<vmem>>) attributes {dimension_semantics = [#tpu.dimension_semantics<parallel>], iteration_bounds = array<i64: 1>, scalar_prefetch = 0 : i64, scratch_operands = 0 : i64, tpu.core_type = #tpu.core_type<tc>, window_params = [{transform_indices = @transform_0, window_bounds = array<i64: 8, 128>}, {pipeline_mode = #tpu.pipeline_mode<synchronous>, transform_indices = @transform_1, window_bounds = array<i64: 128, 4>}, {transform_indices = @transform_2, window_bounds = array<i64: 1>}, {transform_indices = @transform_3, window_bounds = array<i64: 8, 4>}]} {
    %c0 = arith.constant 0 : index
    %c0_0 = arith.constant 0 : index
    %0 = vector.load %arg1[%c0, %c0_0] : memref<8x128xf32, #tpu.memory_space<vmem>>, vector<8x128xf32>
    %c0_1 = arith.constant 0 : index
    %c0_2 = arith.constant 0 : index
    %1 = vector.load %arg2[%c0_1, %c0_2] : memref<128x4xf32, #tpu.memory_space<vmem>>, vector<128x4xf32>
    %cst = arith.constant dense<0.000000e+00> : vector<8x4xf32>
    %2 = tpu.matmul %0, %1, %cst {dimension_numbers = #tpu.dot_dimension_numbers<[1], [0], [0], [1], [0, 0, 1, 1], [], []>} : vector<8x128xf32>, vector<128x4xf32>, vector<8x4xf32> -> vector<8x4xf32>
    %c0_3 = arith.constant 0 : index
    %3 = memref.load %arg3[%c0_3] : memref<1xf32, #tpu.memory_space<smem>>
    %4 = vector.broadcast %3 : f32 to vector<8x4xf32>
    %5 = arith.addf %2, %4 : vector<8x4xf32>
    %cst_4 = arith.constant 0.000000e+00 : f32
    %6 = vector.broadcast %cst_4 : f32 to vector<8x4xf32>
    %7 = arith.subf %6, %5 : vector<8x4xf32>
    %8 = math.exp %7 : vector<8x4xf32>
    %cst_5 = arith.constant 1.000000e+00 : f32
    %9 = vector.broadcast %cst_5 : f32 to vector<8x4xf32>
    %10 = arith.addf %9, %8 : vector<8x4xf32>
    %cst_6 = arith.constant 1.000000e+00 : f32
    %11 = vector.broadcast %cst_6 : f32 to vector<8x4xf32>
    %12 = arith.divf %11, %10 : vector<8x4xf32>
    %c0_7 = arith.constant 0 : index
    %c0_8 = arith.constant 0 : index
    %13 = vector.load %arg4[%c0_7, %c0_8] : memref<8x4xf32, #tpu.memory_space<vmem>>, vector<8x4xf32>
    tpu.vector_store %arg4[%c0_7, %c0_8], %12 {strides = array<i32>} : memref<8x4xf32, #tpu.memory_space<vmem>>, vector<8x4xf32>,
    return
  }
  func.func @transform_0(%arg0: i32) -> (i32, i32) {
    %c0_i32 = arith.constant 0 : i32
    %c0_i32_0 = arith.constant 0 : i32
    return %arg0, %c0_i32 : i32, i32
  }
  func.func @transform_1(%arg0: i32) -> (i32, i32) {
    %c0_i32 = arith.constant 0 : i32
    %c0_i32_0 = arith.constant 0 : i32
    %c0_i32_1 = arith.constant 0 : i32
    return %c0_i32, %c0_i32_0 : i32, i32
  }
  func.func @transform_2(%arg0: i32) -> i32 {
    %c0_i32 = arith.constant 0 : i32
    %c0_i32_0 = arith.constant 0 : i32
    return %c0_i32 : i32
  }
  func.func @transform_3(%arg0: i32) -> (i32, i32) {
    %c0_i32 = arith.constant 0 : i32
    %c0_i32_0 = arith.constant 0 : i32
    return %arg0, %c0_i32 : i32, i32
  }
}

</mosaic_0001>

<bundles_post_ra>
// kernel: mlp_forward.1
= control target key start
LH: loop header
LB: loop body
LE: loop exit
PB: predicated region body
PF: predicated region fallthrough
CT: control target
= control target key end

     0   :  { %v174_v0 = vmov 0.0   ;;  %vm175_vm0 = vmmov 0   ;;  %vm110_vm1 = vcmask 31744   ;;  %s253_s1 = inlined_call_operand.vmem [shape: f32[128,4], index: 1, kind: input, shape index: {}]   ;;  %s254_s0 = inlined_call_operand.vmem [shape: f32[5,128], index: 0, kind: input, shape index: {}]   ;;  %s255_s2 = inlined_call_operand.<no memory space> [shape: f32[1], index: 2, kind: input, shape index: {}]   ;;  %s256_s3 = inlined_call_operand.vmem [shape: f32[8,4], index: 3, kind: output, shape index: {}]  }
   0x1   :  { %133 = vmatprep.subr.mxu0 %v174_v0  ;;  %v31_v1 = vld [vmem:[%s253_s1 + $0x78] sm:$0xff]  ;;  %v30_v2 = vld [vmem:[%s253_s1 + $0x70] sm:$0xff]  ;;  %165 = vmatprep.mubr.msk.f32.mxu0 %vm175_vm0, %v174_v0  ;;  %v29_v3 = vld [vmem:[%s253_s1 + $0x68] sm:$0xff]  ;;  %v33_v18 = vstv %s255_s2 }
   0x2   :  { %134 = vmatpush3.msra.mxu0 %v31_v1  ;;  %v28_v4 = vld [vmem:[%s253_s1 + $0x60] sm:$0xff]  ;;  %v27_v5 = vld [vmem:[%s253_s1 + $0x58] sm:$0xff]  ;;  %v26_v6 = vld [vmem:[%s253_s1 + $0x50] sm:$0xff] }
   0x3   :  { %135 = vmatprep.subr.mxu0 %v174_v0  ;;  %v25_v7 = vld [vmem:[%s253_s1 + $0x48] sm:$0xff]  ;;  %v24_v8 = vld [vmem:[%s253_s1 + $0x40] sm:$0xff]  ;;  %v23_v9 = vld [vmem:[%s253_s1 + $0x38] sm:$0xff] }
   0x4   :  { %136 = vmatpush3.msra.mxu0 %v30_v2  ;;  %v22_v10 = vld [vmem:[%s253_s1 + $0x30] sm:$0xff]  ;;  %v21_v11 = vld [vmem:[%s253_s1 + $0x28] sm:$0xff]  ;;  %v20_v12 = vld [vmem:[%s253_s1 + $0x20] sm:$0xff] }
   0x5   :  { %137 = vmatprep.subr.mxu0 %v174_v0  ;;  %v19_v13 = vld [vmem:[%s253_s1 + $0x18] sm:$0xff]  ;;  %v18_v14 = vld [vmem:[%s253_s1 + $0x10] sm:$0xff]  ;;  %v17_v15 = vld [vmem:[%s253_s1 + $0x8] sm:$0xff] }
   0x6   :  { %138 = vmatpush3.msra.mxu0 %v29_v3  ;;  %v16_v16 = vld [vmem:[%s253_s1] sm:$0xff] }
   0x7   :  { %139 = vmatprep.subr.mxu0 %v174_v0  ;;  %v15_v17 = vld [vmem:[%s254_s0] sm:$0xff] }
   0x8   :  { %140 = vmatpush3.msra.mxu0 %v28_v4 }
   0x9   :  { %141 = vmatprep.subr.mxu0 %v174_v0 }
   0xa   :  { %142 = vmatpush3.msra.mxu0 %v27_v5 }
   0xb   :  { %143 = vmatprep.subr.mxu0 %v174_v0 }
   0xc   :  { %144 = vmatpush3.msra.mxu0 %v26_v6 }
   0xd   :  { %145 = vmatprep.subr.mxu0 %v174_v0 }
   0xe   :  { %146 = vmatpush3.msra.mxu0 %v25_v7 }
   0xf   :  { %147 = vmatprep.subr.mxu0 %v174_v0 }
  0x10   :  { %148 = vmatpush3.msra.mxu0 %v24_v8 }
  0x11   :  { %149 = vmatprep.subr.mxu0 %v174_v0 }
  0x12   :  { %150 = vmatpush3.msra.mxu0 %v23_v9 }
  0x13   :  { %151 = vmatprep.subr.mxu0 %v174_v0 }
  0x14   :  { %152 = vmatpush3.msra.mxu0 %v22_v10 }
  0x15   :  { %153 = vmatprep.subr.mxu0 %v174_v0 }
  0x16   :  { %154 = vmatpush3.msra.mxu0 %v21_v11 }
  0x17   :  { %155 = vmatprep.subr.mxu0 %v174_v0 }
  0x18   :  { %156 = vmatpush3.msra.mxu0 %v20_v12 }
  0x19   :  { %157 = vmatprep.subr.mxu0 %v174_v0 }
  0x1a   :  { %158 = vmatpush3.msra.mxu0 %v19_v13 }
  0x1b   :  { %159 = vmatprep.subr.mxu0 %v174_v0 }
  0x1c   :  { %160 = vmatpush3.msra.mxu0 %v18_v14 }
  0x1d   :  { %161 = vmatprep.subr.mxu0 %v174_v0 }
  0x1e   :  { %162 = vmatpush3.msra.mxu0 %v17_v15 }
  0x1f   :  { %163 = vmatprep.subr.mxu0 %v174_v0 }
  0x20   :  { %164 = vmatpush3.msra.mxu0 %v16_v16 }
  0x21   :  { %166 = vmatmul.mubr.f32.vlgmr.msra.gmra.mxu0 %v15_v17 }
  0xe1   :  { %v100_v19 = vpop.f32.mrf.mxu0 }
  0xe2   :  { %v101_v20 = vadd.f32 %v100_v19, %v33_v18 }
  0xe3   :  { %v167_v21 = vpop.f32.mrf.mxu0 }
  0xe4   :  { %v104_v22 = vsub.f32 0.0, %v101_v20 }
  0xe6   :  { %v105_v23 = vmul.f32 1.442695, %v104_v22 }
  0xe8   :  { %170 = vpow2.f32 %v105_v23 }
  0xf5   :  { %v171_v24 = vpop.eup %170 }
  0xf6   :  { %v107_v25 = vadd.f32 1.0, %v171_v24 }
  0xf8   :  { %172 = vrcp.f32 %v107_v25 }
 0x105   :  { %v173_v26 = vpop.eup %172 }
 0x106   :  { %111 = vst.msk [vmem:[%s256_s3] sm:$0xff] %vm110_vm1, %v173_v26 }

</bundles_post_ra>
